<compile_context>
chip_gen: v7x
topology: tpu7x:2x2x1
jax: 0.10.0
libtpu: 0.0.40
codegen_flags: <defaults>
</compile_context>

<pallas_src>
import math
import jax
import jax.numpy as jnp
from jax.experimental import pallas as pl
from jax.experimental.pallas import tpu as pltpu


# ---------------------------------------------------------------------------
# Fused GeneratorBlock kernel (one grid step per batch element)
# ---------------------------------------------------------------------------
def _make_fused_kernel(H, W, K, Cin, Cout, eps, slope, mxu_dtype):
    HW = H * W
    KK = K * K
    M1 = KK * Cin           # modulation width, style block 1
    M2 = KK * Cout          # modulation width, style block 2
    pad = (K - 1) // 2
    # flattened-lane shift for every conv tap (kh, kw)
    tap_shift = [(kh - pad) * W + (kw - pad)
                 for kh in range(K) for kw in range(K)]

    def _leaky(v):
        return jnp.where(v >= 0.0, v, slope * v)

    def _shift_lanes(x, d):
        # y[:, i] = x[:, i + d] (circular; wrap positions are masked out below)
        if d == 0:
            return x
        return jnp.roll(x, -d, axis=1)

    def kernel(p1_ref, wlat_ref, n0_ref, n1_ref,
               wexp_ref, bexp_ref, w1_ref, w2_ref, w3_ref,
               mask_ref, bias12_ref, sc_ref,
               ox_ref, orgb_ref):
        # ---- all three style projections, pre-tiled per tap: one tiny matmul
        m_all = jnp.dot(wlat_ref[0], wexp_ref[...],
                        preferred_element_type=jnp.float32) + bexp_ref[...]
        m1 = m_all[:, :M1]                   # [1, K*K*Cin]
        m2 = m_all[:, M1:M1 + M2]            # [1, K*K*Cout]
        m3 = m_all[:, M1 + M2:]              # [1, Cout]

        # ---- style block 1: modulate / demodulate / one im2col matmul ------
        wm1 = w1_ref[...] * m1                                    # [Cout, KK*Cin]
        wm1 = wm1 * jax.lax.rsqrt(
            jnp.sum(wm1 * wm1, axis=1, keepdims=True) + eps)
        y1 = jnp.dot(wm1.astype(mxu_dtype), p1_ref[0].astype(mxu_dtype),
                     preferred_element_type=jnp.float32)          # [Cout, H*W]
        y1 = y1 + sc_ref[0] * n0_ref[0]                           # scaled noise
        act1 = _leaky(y1 + bias12_ref[:, 0:1])                    # stays on-chip

        # ---- style block 2: in-VMEM im2col (lane shifts + masks), one matmul
        mask = mask_ref[...]                                      # [KK, H*W]
        taps = [_shift_lanes(act1, d) * mask[t:t + 1, :]
                for t, d in enumerate(tap_shift)]
        p2 = jnp.concatenate(taps, axis=0)                        # [KK*Cout, H*W]

        wm2 = w2_ref[...] * m2                                    # [Cout, KK*Cout]
        wm2 = wm2 * jax.lax.rsqrt(
            jnp.sum(wm2 * wm2, axis=1, keepdims=True) + eps)
        y2 = jnp.dot(wm2.astype(mxu_dtype), p2.astype(mxu_dtype),
                     preferred_element_type=jnp.float32)
        y2 = y2 + sc_ref[1] * n1_ref[0]
        act2 = _leaky(y2 + bias12_ref[:, 1:2])
        ox_ref[0] = act2                                          # lane-dense store

        # ---- ToRGB: 1x1 modulated conv (no demod) + bias + LeakyReLU -------
        wm3 = w3_ref[...] * m3                                    # [1, Cout]
        y3 = jnp.dot(wm3.astype(mxu_dtype), act2.astype(mxu_dtype),
                     preferred_element_type=jnp.float32)          # [1, H*W]
        orgb_ref[0] = _leaky(y3 + sc_ref[2])

    return kernel


# ---------------------------------------------------------------------------
# Wrapper: parameter plumbing (layout only) + one pallas_call
# ---------------------------------------------------------------------------
def generator_block_forward(x, w_latent, noise0, noise1, p, *,
                            mxu_dtype=jnp.bfloat16):
    """x: [B,Cin,H,W] (NCHW), w_latent: [B,d_latent], noise*: [B,1,H,W].
       Returns (x_out [B,Cout,H,W], rgb [B,1,H,W])."""
    f32 = jnp.float32
    B, Cin, H, W = x.shape
    Cout, _, K, _ = p["sb1_conv_w"].shape
    KK, HW = K * K, H * W
    pad = (K - 1) // 2
    d_latent = w_latent.shape[1]
    eps, slope = 1e-8, 0.2

    # layer-1 im2col built once in the wrapper (lane-dense [B, K*K*Cin, H*W])
    xpad = jnp.pad(x.astype(f32), ((0, 0), (0, 0), (pad, pad), (pad, pad)))
    p1 = jnp.stack([xpad[:, :, kh:kh + H, kw:kw + W]
                    for kh in range(K) for kw in range(K)], axis=1)
    p1 = p1.reshape(B, KK * Cin, HW)

    # conv weights flattened to [Cout, taps*Cin]; equalized-lr constants folded in
    c1 = 1.0 / math.sqrt(Cin * KK)
    c2 = 1.0 / math.sqrt(Cout * KK)
    c3 = 1.0 / math.sqrt(Cout)
    w1f = jnp.transpose(p["sb1_conv_w"].astype(f32),
                        (0, 2, 3, 1)).reshape(Cout, KK * Cin) * c1
    w2f = jnp.transpose(p["sb2_conv_w"].astype(f32),
                        (0, 2, 3, 1)).reshape(Cout, KK * Cout) * c2
    w3f = p["rgb_conv_w"].astype(f32).reshape(1, Cout) * c3

    # three style linears fused into one affine map, pre-tiled per conv tap
    cs = 1.0 / math.sqrt(d_latent)
    a1 = (p["sb1_style_w"].astype(f32) * cs).T       # [d_latent, Cin]
    a2 = (p["sb2_style_w"].astype(f32) * cs).T       # [d_latent, Cout]
    a3 = (p["rgb_style_w"].astype(f32) * cs).T       # [d_latent, Cout]
    wexp = jnp.concatenate(
        [jnp.tile(a1, (1, KK)), jnp.tile(a2, (1, KK)), a3], axis=1)
    bexp = jnp.concatenate([jnp.tile(p["sb1_style_b"].astype(f32), KK),
                            jnp.tile(p["sb2_style_b"].astype(f32), KK),
                            p["rgb_style_b"].astype(f32)]).reshape(1, -1)
    mtot = KK * Cin + KK * Cout + Cout

    # validity masks for the in-kernel (layer-2) im2col taps
    hh = jnp.arange(H).reshape(H, 1)
    ww = jnp.arange(W).reshape(1, W)
    masks = []
    for kh in range(K):
        for kw in range(K):
            dh, dw = kh - pad, kw - pad
            ok = ((hh + dh >= 0) & (hh + dh < H) &
                  (ww + dw >= 0) & (ww + dw < W))
            masks.append(ok.astype(f32).reshape(HW))
    tap_mask = jnp.stack(masks, axis=0)              # [K*K, H*W]

    bias12 = jnp.stack([p["sb1_bias"].astype(f32),
                        p["sb2_bias"].astype(f32)], axis=1)     # [Cout, 2]
    scalars = jnp.concatenate([p["sb1_scale_noise"].astype(f32),
                               p["sb2_scale_noise"].astype(f32),
                               p["rgb_bias"].astype(f32)])      # [3] -> SMEM

    wlat = w_latent.astype(f32).reshape(B, 1, d_latent)
    n0 = noise0.astype(f32).reshape(B, 1, HW)
    n1 = noise1.astype(f32).reshape(B, 1, HW)

    kernel = _make_fused_kernel(H, W, K, Cin, Cout, eps, slope, mxu_dtype)

    grid_spec = pltpu.PrefetchScalarGridSpec(
        num_scalar_prefetch=0,
        grid=(B,),
        in_specs=[
            pl.BlockSpec((1, KK * Cin, HW), lambda b: (b, 0, 0)),   # im2col(x)
            pl.BlockSpec((1, 1, d_latent), lambda b: (b, 0, 0)),    # w_latent
            pl.BlockSpec((1, 1, HW), lambda b: (b, 0, 0)),          # noise0
            pl.BlockSpec((1, 1, HW), lambda b: (b, 0, 0)),          # noise1
            pl.BlockSpec((d_latent, mtot), lambda b: (0, 0)),       # fused style map
            pl.BlockSpec((1, mtot), lambda b: (0, 0)),              # fused style bias
            pl.BlockSpec((Cout, KK * Cin), lambda b: (0, 0)),       # conv1 weight
            pl.BlockSpec((Cout, KK * Cout), lambda b: (0, 0)),      # conv2 weight
            pl.BlockSpec((1, Cout), lambda b: (0, 0)),              # rgb weight
            pl.BlockSpec((KK, HW), lambda b: (0, 0)),               # tap masks
            pl.BlockSpec((Cout, 2), lambda b: (0, 0)),              # conv biases
            pl.BlockSpec(memory_space=pltpu.MemorySpace.SMEM),      # [sn1,sn2,rgb_b]
        ],
        out_specs=[
            pl.BlockSpec((1, Cout, HW), lambda b: (b, 0, 0)),       # lane-dense
            pl.BlockSpec((1, 1, HW), lambda b: (b, 0, 0)),
        ],
    )

    # grid=(B,) is "parallel": v7x megacore shards batch elements across its 2 TCs.
    # At production StyleGAN sizes (C~512, H,W>=64) add Cout / H-row tiling as extra
    # grid axes and set vmem_limit_bytes (v7x only has 64 MiB VMEM).
    x_out, rgb = pl.pallas_call(
        kernel,
        out_shape=(jax.ShapeDtypeStruct((B, Cout, HW), f32),
                   jax.ShapeDtypeStruct((B, 1, HW), f32)),
        grid_spec=grid_spec,
        compiler_params=pltpu.CompilerParams(
            dimension_semantics=("parallel",)),
    )(p1, wlat, n0, n1, wexp, bexp, w1f, w2f, w3f, tap_mask, bias12, scalars)

    return x_out.reshape(B, Cout, H, W), rgb.reshape(B, 1, H, W)


# ---------------------------------------------------------------------------
# Pure-JAX reference (mirrors the PyTorch module, NCHW). The conv operands are
# rounded to bf16 exactly like the kernel's MXU inputs (f32 accumulation), so
# the comparison checks logic, not mixed-precision noise.
# ---------------------------------------------------------------------------
def _leaky_ref(v):
    return jnp.where(v >= 0, v, 0.2 * v)


def _bf16(v):
    return v.astype(jnp.bfloat16).astype(jnp.float32)


def _ref_linear(x, weight, bias):
    c = 1.0 / math.sqrt(weight.shape[1])
    return jnp.dot(x, (weight * c).T,
                   precision=jax.lax.Precision.HIGHEST) + bias


def _ref_modconv(x, s, weight, demodulate, eps=1e-8):
    B, Cin, H, W = x.shape
    Cout, _, K, _ = weight.shape
    c = 1.0 / math.sqrt(Cin * K * K)
    ws = weight[None] * c * s[:, None, :, None, None]           # [B,Cout,Cin,K,K]
    if demodulate:
        ws = ws * jax.lax.rsqrt(
            jnp.sum(ws ** 2, axis=(2, 3, 4), keepdims=True) + eps)
    ws, xb = _bf16(ws), _bf16(x)        # mirror the kernel's bf16 MXU operands
    pad = (K - 1) // 2
    outs = []
    for b in range(B):
        outs.append(jax.lax.conv_general_dilated(
            xb[b:b + 1], ws[b], (1, 1), [(pad, pad), (pad, pad)],
            dimension_numbers=("NCHW", "OIHW", "NCHW"),
            precision=jax.lax.Precision.HIGHEST))
    return jnp.concatenate(outs, axis=0)


def _ref_generator_block(x, w, noise0, noise1, p):
    s = _ref_linear(w, p["sb1_style_w"], p["sb1_style_b"])
    x = _ref_modconv(x, s, p["sb1_conv_w"], True)
    x = x + p["sb1_scale_noise"][None, :, None, None] * noise0
    x = _leaky_ref(x + p["sb1_bias"][None, :, None, None])
    s = _ref_linear(w, p["sb2_style_w"], p["sb2_style_b"])
    x = _ref_modconv(x, s, p["sb2_conv_w"], True)
    x = x + p["sb2_scale_noise"][None, :, None, None] * noise1
    x = _leaky_ref(x + p["sb2_bias"][None, :, None, None])
    s = _ref_linear(w, p["rgb_style_w"], p["rgb_style_b"])
    rgb = _ref_modconv(x, s, p["rgb_conv_w"], False)
    rgb = _leaky_ref(rgb + p["rgb_bias"][None, :, None, None])
    return x, rgb


# ---------------------------------------------------------------------------
if __name__ == "__main__":
    B, d_latent, in_features, out_features, H, W = 2, 32, 4, 8, 16, 16

    key = jax.random.PRNGKey(0)
    ks = jax.random.split(key, 18)
    f32 = jnp.float32

    params = {
        # StyleBlock 1
        "sb1_style_w": jax.random.normal(ks[0], (in_features, d_latent), f32),
        "sb1_style_b": 1.0 + 0.1 * jax.random.normal(ks[1], (in_features,), f32),
        "sb1_conv_w": jax.random.normal(ks[2], (out_features, in_features, 3, 3), f32),
        "sb1_scale_noise": 0.1 * jax.random.normal(ks[3], (1,), f32),
        "sb1_bias": 0.1 * jax.random.normal(ks[4], (out_features,), f32),
        # StyleBlock 2
        "sb2_style_w": jax.random.normal(ks[5], (out_features, d_latent), f32),
        "sb2_style_b": 1.0 + 0.1 * jax.random.normal(ks[6], (out_features,), f32),
        "sb2_conv_w": jax.random.normal(ks[7], (out_features, out_features, 3, 3), f32),
        "sb2_scale_noise": 0.1 * jax.random.normal(ks[8], (1,), f32),
        "sb2_bias": 0.1 * jax.random.normal(ks[9], (out_features,), f32),
        # ToRGB (grayscale -> 1 channel, 1x1 conv, no demod)
        "rgb_style_w": jax.random.normal(ks[10], (out_features, d_latent), f32),
        "rgb_style_b": 1.0 + 0.1 * jax.random.normal(ks[11], (out_features,), f32),
        "rgb_conv_w": jax.random.normal(ks[12], (1, out_features, 1, 1), f32),
        "rgb_bias": 0.1 * jax.random.normal(ks[13], (1,), f32),
    }

    x = jax.random.normal(ks[14], (B, in_features, H, W), f32)        # NCHW
    w_latent = jax.random.normal(ks[15], (B, d_latent), f32)
    noise0 = jax.random.normal(ks[16], (B, 1, H, W), f32)
    noise1 = jax.random.normal(ks[17], (B, 1, H, W), f32)

    fwd = jax.jit(generator_block_forward)
    x_out, rgb_out = fwd(x, w_latent, noise0, noise1, params)
    x_out = jax.block_until_ready(x_out)
    rgb_out = jax.block_until_ready(rgb_out)

    x_ref, rgb_ref = _ref_generator_block(x, w_latent, noise0, noise1, params)

    assert x_out.shape == (B, out_features, H, W)
    assert rgb_out.shape == (B, 1, H, W)
    # Both kernel and reference use bf16 MXU operands with f32 accumulation, so
    # residual differences are accumulation-order noise + the tiny f32 style delta.
    assert jnp.allclose(x_out, x_ref, atol=1e-2, rtol=1e-2), (
        float(jnp.max(jnp.abs(x_out - x_ref))))
    assert jnp.allclose(rgb_out, rgb_ref, atol=1e-2, rtol=1e-2), (
        float(jnp.max(jnp.abs(rgb_out - rgb_ref))))

    print("KERNEL_OK")
</pallas_src>

<mosaic_0001>
module attributes {stable_mosaic.version = 11 : i64} {
  func.func @kernel(%arg0: i32, %arg1: memref<1x36x256xf32, #tpu.memory_space<vmem>>, %arg2: memref<1x1x32xf32, #tpu.memory_space<vmem>>, %arg3: memref<1x1x256xf32, #tpu.memory_space<vmem>>, %arg4: memref<1x1x256xf32, #tpu.memory_space<vmem>>, %arg5: memref<32x116xf32, #tpu.memory_space<vmem>>, %arg6: memref<1x116xf32, #tpu.memory_space<vmem>>, %arg7: memref<8x36xf32, #tpu.memory_space<vmem>>, %arg8: memref<8x72xf32, #tpu.memory_space<vmem>>, %arg9: memref<1x8xf32, #tpu.memory_space<vmem>>, %arg10: memref<9x256xf32, #tpu.memory_space<vmem>>, %arg11: memref<8x2xf32, #tpu.memory_space<vmem>>, %arg12: memref<3xf32, #tpu.memory_space<smem>>, %arg13: memref<1x8x256xf32, #tpu.memory_space<vmem>>, %arg14: memref<1x1x256xf32, #tpu.memory_space<vmem>>) attributes {dimension_semantics = [#tpu.dimension_semantics<parallel>], iteration_bounds = array<i64: 2>, scalar_prefetch = 0 : i64, scratch_operands = 0 : i64, tpu.core_type = #tpu.core_type<tc>, window_params = [{transform_indices = @transform_0, window_bounds = array<i64: 1, 36, 256>}, {transform_indices = @transform_1, window_bounds = array<i64: 1, 1, 32>}, {transform_indices = @transform_2, window_bounds = array<i64: 1, 1, 256>}, {transform_indices = @transform_3, window_bounds = array<i64: 1, 1, 256>}, {pipeline_mode = #tpu.pipeline_mode<synchronous>, transform_indices = @transform_4, window_bounds = array<i64: 32, 116>}, {pipeline_mode = #tpu.pipeline_mode<synchronous>, transform_indices = @transform_5, window_bounds = array<i64: 1, 116>}, {pipeline_mode = #tpu.pipeline_mode<synchronous>, transform_indices = @transform_6, window_bounds = array<i64: 8, 36>}, {pipeline_mode = #tpu.pipeline_mode<synchronous>, transform_indices = @transform_7, window_bounds = array<i64: 8, 72>}, {pipeline_mode = #tpu.pipeline_mode<synchronous>, transform_indices = @transform_8, window_bounds = array<i64: 1, 8>}, {pipeline_mode = #tpu.pipeline_mode<synchronous>, transform_indices = @transform_9, window_bounds = array<i64: 9, 256>}, {pipeline_mode = #tpu.pipeline_mode<synchronous>, transform_indices = @transform_10, window_bounds = array<i64: 8, 2>}, {transform_indices = @transform_11, window_bounds = array<i64: 3>}, {transform_indices = @transform_12, window_bounds = array<i64: 1, 8, 256>}, {transform_indices = @transform_13, window_bounds = array<i64: 1, 1, 256>}]} {
    %c0 = arith.constant 0 : index
    %c0_0 = arith.constant 0 : index
    %c0_1 = arith.constant 0 : index
    %0 = vector.load %arg2[%c0, %c0_0, %c0_1] : memref<1x1x32xf32, #tpu.memory_space<vmem>>, vector<1x1x32xf32>
    %1 = vector.shape_cast %0 : vector<1x1x32xf32> to vector<1x32xf32>
    %c0_2 = arith.constant 0 : index
    %c0_3 = arith.constant 0 : index
    %2 = vector.load %arg5[%c0_2, %c0_3] : memref<32x116xf32, #tpu.memory_space<vmem>>, vector<32x116xf32>
    %cst = arith.constant dense<0.000000e+00> : vector<1x116xf32>
    %3 = tpu.matmul %1, %2, %cst {dimension_numbers = #tpu.dot_dimension_numbers<[1], [0], [0], [1], [0, 0, 1, 1], [], []>} : vector<1x32xf32>, vector<32x116xf32>, vector<1x116xf32> -> vector<1x116xf32>
    %c0_4 = arith.constant 0 : index
    %c0_5 = arith.constant 0 : index
    %4 = vector.load %arg6[%c0_4, %c0_5] : memref<1x116xf32, #tpu.memory_space<vmem>>, vector<1x116xf32>
    %5 = arith.addf %3, %4 : vector<1x116xf32>
    %6 = vector.extract_strided_slice %5 {offsets = [0, 0], sizes = [1, 36], strides = [1, 1]} : vector<1x116xf32> to vector<1x36xf32>
    %7 = vector.extract_strided_slice %5 {offsets = [0, 36], sizes = [1, 72], strides = [1, 1]} : vector<1x116xf32> to vector<1x72xf32>
    %8 = vector.extract_strided_slice %5 {offsets = [0, 108], sizes = [1, 8], strides = [1, 1]} : vector<1x116xf32> to vector<1x8xf32>
    %c0_6 = arith.constant 0 : index
    %c0_7 = arith.constant 0 : index
    %9 = vector.load %arg7[%c0_6, %c0_7] : memref<8x36xf32, #tpu.memory_space<vmem>>, vector<8x36xf32>
    %10 = vector.broadcast %6 : vector<1x36xf32> to vector<8x36xf32>
    %11 = arith.mulf %9, %10 : vector<8x36xf32>
    %12 = arith.mulf %11, %11 : vector<8x36xf32>
    %cst_8 = arith.constant dense<0.000000e+00> : vector<8xf32>
    %13 = vector.multi_reduction <add>, %12, %cst_8 [1] : vector<8x36xf32> to vector<8xf32>
    %14 = vector.shape_cast %13 : vector<8xf32> to vector<8x1xf32>
    %cst_9 = arith.constant 9.99999993E-9 : f32
    %15 = vector.broadcast %cst_9 : f32 to vector<8x1xf32>
    %16 = arith.addf %14, %15 : vector<8x1xf32>
    %17 = math.rsqrt %16 : vector<8x1xf32>
    %18 = vector.broadcast %17 : vector<8x1xf32> to vector<8x36xf32>
    %19 = arith.mulf %11, %18 : vector<8x36xf32>
    %20 = arith.truncf %19 : vector<8x36xf32> to vector<8x36xbf16>
    %c0_10 = arith.constant 0 : index
    %c0_11 = arith.constant 0 : index
    %c0_12 = arith.constant 0 : index
    %21 = vector.load %arg1[%c0_10, %c0_11, %c0_12] : memref<1x36x256xf32, #tpu.memory_space<vmem>>, vector<1x36x256xf32>
    %22 = vector.shape_cast %21 : vector<1x36x256xf32> to vector<36x256xf32>
    %23 = arith.truncf %22 : vector<36x256xf32> to vector<36x256xbf16>
    %cst_13 = arith.constant dense<0.000000e+00> : vector<8x256xf32>
    %24 = tpu.matmul %20, %23, %cst_13 {dimension_numbers = #tpu.dot_dimension_numbers<[1], [0], [0], [1], [0, 0, 1, 1], [], []>} : vector<8x36xbf16>, vector<36x256xbf16>, vector<8x256xf32> -> vector<8x256xf32>
    %c0_14 = arith.constant 0 : index
    %25 = memref.load %arg12[%c0_14] : memref<3xf32, #tpu.memory_space<smem>>
    %c0_15 = arith.constant 0 : index
    %c0_16 = arith.constant 0 : index
    %c0_17 = arith.constant 0 : index
    %26 = vector.load %arg3[%c0_15, %c0_16, %c0_17] : memref<1x1x256xf32, #tpu.memory_space<vmem>>, vector<1x1x256xf32>
    %27 = vector.shape_cast %26 : vector<1x1x256xf32> to vector<1x256xf32>
    %28 = vector.broadcast %25 : f32 to vector<1x256xf32>
    %29 = arith.mulf %28, %27 : vector<1x256xf32>
    %30 = vector.broadcast %29 : vector<1x256xf32> to vector<8x256xf32>
    %31 = arith.addf %24, %30 : vector<8x256xf32>
    %c0_18 = arith.constant 0 : index
    %c0_19 = arith.constant 0 : index
    %32 = vector.load %arg11[%c0_18, %c0_19] : memref<8x2xf32, #tpu.memory_space<vmem>>, vector<8x1xf32>
    %33 = vector.broadcast %32 : vector<8x1xf32> to vector<8x256xf32>
    %34 = arith.addf %31, %33 : vector<8x256xf32>
    %cst_20 = arith.constant 0.000000e+00 : f32
    %35 = vector.broadcast %cst_20 : f32 to vector<8x256xf32>
    %36 = arith.cmpf oge, %34, %35 : vector<8x256xf32>
    %cst_21 = arith.constant 2.000000e-01 : f32
    %37 = vector.broadcast %cst_21 : f32 to vector<8x256xf32>
    %38 = arith.mulf %37, %34 : vector<8x256xf32>
    %39 = arith.select %36, %34, %38 : vector<8x256xi1>, vector<8x256xf32>
    %c0_22 = arith.constant 0 : index
    %c0_23 = arith.constant 0 : index
    %40 = vector.load %arg10[%c0_22, %c0_23] : memref<9x256xf32, #tpu.memory_space<vmem>>, vector<9x256xf32>
    %41 = vector.extract_strided_slice %39 {offsets = [0, 239], sizes = [8, 17], strides = [1, 1]} : vector<8x256xf32> to vector<8x17xf32>
    %42 = vector.extract_strided_slice %39 {offsets = [0, 0], sizes = [8, 239], strides = [1, 1]} : vector<8x256xf32> to vector<8x239xf32>
    %43 = tpu.concatenate %41, %42 in 1 : vector<8x17xf32>, vector<8x239xf32> -> vector<8x256xf32>
    %44 = vector.extract_strided_slice %40 {offsets = [0, 0], sizes = [1, 256], strides = [1, 1]} : vector<9x256xf32> to vector<1x256xf32>
    %45 = vector.broadcast %44 : vector<1x256xf32> to vector<8x256xf32>
    %46 = arith.mulf %43, %45 : vector<8x256xf32>
    %47 = vector.extract_strided_slice %39 {offsets = [0, 240], sizes = [8, 16], strides = [1, 1]} : vector<8x256xf32> to vector<8x16xf32>
    %48 = vector.extract_strided_slice %39 {offsets = [0, 0], sizes = [8, 240], strides = [1, 1]} : vector<8x256xf32> to vector<8x240xf32>
    %49 = tpu.concatenate %47, %48 in 1 : vector<8x16xf32>, vector<8x240xf32> -> vector<8x256xf32>
    %50 = vector.extract_strided_slice %40 {offsets = [1, 0], sizes = [1, 256], strides = [1, 1]} : vector<9x256xf32> to vector<1x256xf32>
    %51 = vector.broadcast %50 : vector<1x256xf32> to vector<8x256xf32>
    %52 = arith.mulf %49, %51 : vector<8x256xf32>
    %53 = vector.extract_strided_slice %39 {offsets = [0, 241], sizes = [8, 15], strides = [1, 1]} : vector<8x256xf32> to vector<8x15xf32>
    %54 = vector.extract_strided_slice %39 {offsets = [0, 0], sizes = [8, 241], strides = [1, 1]} : vector<8x256xf32> to vector<8x241xf32>
    %55 = tpu.concatenate %53, %54 in 1 : vector<8x15xf32>, vector<8x241xf32> -> vector<8x256xf32>
    %56 = vector.extract_strided_slice %40 {offsets = [2, 0], sizes = [1, 256], strides = [1, 1]} : vector<9x256xf32> to vector<1x256xf32>
    %57 = vector.broadcast %56 : vector<1x256xf32> to vector<8x256xf32>
    %58 = arith.mulf %55, %57 : vector<8x256xf32>
    %59 = vector.extract_strided_slice %39 {offsets = [0, 255], sizes = [8, 1], strides = [1, 1]} : vector<8x256xf32> to vector<8x1xf32>
    %60 = vector.extract_strided_slice %39 {offsets = [0, 0], sizes = [8, 255], strides = [1, 1]} : vector<8x256xf32> to vector<8x255xf32>
    %61 = tpu.concatenate %59, %60 in 1 : vector<8x1xf32>, vector<8x255xf32> -> vector<8x256xf32>
    %62 = vector.extract_strided_slice %40 {offsets = [3, 0], sizes = [1, 256], strides = [1, 1]} : vector<9x256xf32> to vector<1x256xf32>
    %63 = vector.broadcast %62 : vector<1x256xf32> to vector<8x256xf32>
    %64 = arith.mulf %61, %63 : vector<8x256xf32>
    %65 = vector.extract_strided_slice %40 {offsets = [4, 0], sizes = [1, 256], strides = [1, 1]} : vector<9x256xf32> to vector<1x256xf32>
    %66 = vector.broadcast %65 : vector<1x256xf32> to vector<8x256xf32>
    %67 = arith.mulf %39, %66 : vector<8x256xf32>
    %68 = vector.extract_strided_slice %39 {offsets = [0, 1], sizes = [8, 255], strides = [1, 1]} : vector<8x256xf32> to vector<8x255xf32>
    %69 = vector.extract_strided_slice %39 {offsets = [0, 0], sizes = [8, 1], strides = [1, 1]} : vector<8x256xf32> to vector<8x1xf32>
    %70 = tpu.concatenate %68, %69 in 1 : vector<8x255xf32>, vector<8x1xf32> -> vector<8x256xf32>
    %71 = vector.extract_strided_slice %40 {offsets = [5, 0], sizes = [1, 256], strides = [1, 1]} : vector<9x256xf32> to vector<1x256xf32>
    %72 = vector.broadcast %71 : vector<1x256xf32> to vector<8x256xf32>
    %73 = arith.mulf %70, %72 : vector<8x256xf32>
    %74 = vector.extract_strided_slice %39 {offsets = [0, 15], sizes = [8, 241], strides = [1, 1]} : vector<8x256xf32> to vector<8x241xf32>
    %75 = vector.extract_strided_slice %39 {offsets = [0, 0], sizes = [8, 15], strides = [1, 1]} : vector<8x256xf32> to vector<8x15xf32>
    %76 = tpu.concatenate %74, %75 in 1 : vector<8x241xf32>, vector<8x15xf32> -> vector<8x256xf32>
    %77 = vector.extract_strided_slice %40 {offsets = [6, 0], sizes = [1, 256], strides = [1, 1]} : vector<9x256xf32> to vector<1x256xf32>
    %78 = vector.broadcast %77 : vector<1x256xf32> to vector<8x256xf32>
    %79 = arith.mulf %76, %78 : vector<8x256xf32>
    %80 = vector.extract_strided_slice %39 {offsets = [0, 16], sizes = [8, 240], strides = [1, 1]} : vector<8x256xf32> to vector<8x240xf32>
    %81 = vector.extract_strided_slice %39 {offsets = [0, 0], sizes = [8, 16], strides = [1, 1]} : vector<8x256xf32> to vector<8x16xf32>
    %82 = tpu.concatenate %80, %81 in 1 : vector<8x240xf32>, vector<8x16xf32> -> vector<8x256xf32>
    %83 = vector.extract_strided_slice %40 {offsets = [7, 0], sizes = [1, 256], strides = [1, 1]} : vector<9x256xf32> to vector<1x256xf32>
    %84 = vector.broadcast %83 : vector<1x256xf32> to vector<8x256xf32>
    %85 = arith.mulf %82, %84 : vector<8x256xf32>
    %86 = vector.extract_strided_slice %39 {offsets = [0, 17], sizes = [8, 239], strides = [1, 1]} : vector<8x256xf32> to vector<8x239xf32>
    %87 = vector.extract_strided_slice %39 {offsets = [0, 0], sizes = [8, 17], strides = [1, 1]} : vector<8x256xf32> to vector<8x17xf32>
    %88 = tpu.concatenate %86, %87 in 1 : vector<8x239xf32>, vector<8x17xf32> -> vector<8x256xf32>
    %89 = vector.extract_strided_slice %40 {offsets = [8, 0], sizes = [1, 256], strides = [1, 1]} : vector<9x256xf32> to vector<1x256xf32>
    %90 = vector.broadcast %89 : vector<1x256xf32> to vector<8x256xf32>
    %91 = arith.mulf %88, %90 : vector<8x256xf32>
    %92 = tpu.concatenate %46, %52, %58, %64, %67, %73, %79, %85, %91 in 0 : vector<8x256xf32>, vector<8x256xf32>, vector<8x256xf32>, vector<8x256xf32>, vector<8x256xf32>, vector<8x256xf32>, vector<8x256xf32>, vector<8x256xf32>, vector<8x256xf32> -> vector<72x256xf32>
    %c0_24 = arith.constant 0 : index
    %c0_25 = arith.constant 0 : index
    %93 = vector.load %arg8[%c0_24, %c0_25] : memref<8x72xf32, #tpu.memory_space<vmem>>, vector<8x72xf32>
    %94 = vector.broadcast %7 : vector<1x72xf32> to vector<8x72xf32>
    %95 = arith.mulf %93, %94 : vector<8x72xf32>
    %96 = arith.mulf %95, %95 : vector<8x72xf32>
    %cst_26 = arith.constant dense<0.000000e+00> : vector<8xf32>
    %97 = vector.multi_reduction <add>, %96, %cst_26 [1] : vector<8x72xf32> to vector<8xf32>
    %98 = vector.shape_cast %97 : vector<8xf32> to vector<8x1xf32>
    %cst_27 = arith.constant 9.99999993E-9 : f32
    %99 = vector.broadcast %cst_27 : f32 to vector<8x1xf32>
    %100 = arith.addf %98, %99 : vector<8x1xf32>
    %101 = math.rsqrt %100 : vector<8x1xf32>
    %102 = vector.broadcast %101 : vector<8x1xf32> to vector<8x72xf32>
    %103 = arith.mulf %95, %102 : vector<8x72xf32>
    %104 = arith.truncf %103 : vector<8x72xf32> to vector<8x72xbf16>
    %105 = arith.truncf %92 : vector<72x256xf32> to vector<72x256xbf16>
    %cst_28 = arith.constant dense<0.000000e+00> : vector<8x256xf32>
    %106 = tpu.matmul %104, %105, %cst_28 {dimension_numbers = #tpu.dot_dimension_numbers<[1], [0], [0], [1], [0, 0, 1, 1], [], []>} : vector<8x72xbf16>, vector<72x256xbf16>, vector<8x256xf32> -> vector<8x256xf32>
    %c1 = arith.constant 1 : index
    %107 = memref.load %arg12[%c1] : memref<3xf32, #tpu.memory_space<smem>>
    %c0_29 = arith.constant 0 : index
    %c0_30 = arith.constant 0 : index
    %c0_31 = arith.constant 0 : index
    %108 = vector.load %arg4[%c0_29, %c0_30, %c0_31] : memref<1x1x256xf32, #tpu.memory_space<vmem>>, vector<1x1x256xf32>
    %109 = vector.shape_cast %108 : vector<1x1x256xf32> to vector<1x256xf32>
    %110 = vector.broadcast %107 : f32 to vector<1x256xf32>
    %111 = arith.mulf %110, %109 : vector<1x256xf32>
    %112 = vector.broadcast %111 : vector<1x256xf32> to vector<8x256xf32>
    %113 = arith.addf %106, %112 : vector<8x256xf32>
    %c0_32 = arith.constant 0 : index
    %c1_33 = arith.constant 1 : index
    %114 = vector.load %arg11[%c0_32, %c1_33] : memref<8x2xf32, #tpu.memory_space<vmem>>, vector<8x1xf32>
    %115 = vector.broadcast %114 : vector<8x1xf32> to vector<8x256xf32>
    %116 = arith.addf %113, %115 : vector<8x256xf32>
    %cst_34 = arith.constant 0.000000e+00 : f32
    %117 = vector.broadcast %cst_34 : f32 to vector<8x256xf32>
    %118 = arith.cmpf oge, %116, %117 : vector<8x256xf32>
    %cst_35 = arith.constant 2.000000e-01 : f32
    %119 = vector.broadcast %cst_35 : f32 to vector<8x256xf32>
    %120 = arith.mulf %119, %116 : vector<8x256xf32>
    %121 = arith.select %118, %116, %120 : vector<8x256xi1>, vector<8x256xf32>
    %c0_36 = arith.constant 0 : index
    %c0_37 = arith.constant 0 : index
    %c0_38 = arith.constant 0 : index
    %122 = vector.load %arg13[%c0_36, %c0_37, %c0_38] : memref<1x8x256xf32, #tpu.memory_space<vmem>>, vector<1x8x256xf32>
    %123 = vector.shape_cast %122 : vector<1x8x256xf32> to vector<8x256xf32>
    %124 = vector.shape_cast %121 : vector<8x256xf32> to vector<1x8x256xf32>
    tpu.vector_store %arg13[%c0_36, %c0_37, %c0_38], %124 {strides = array<i32>} : memref<1x8x256xf32, #tpu.memory_space<vmem>>, vector<1x8x256xf32>,
    %c0_39 = arith.constant 0 : index
    %c0_40 = arith.constant 0 : index
    %125 = vector.load %arg9[%c0_39, %c0_40] : memref<1x8xf32, #tpu.memory_space<vmem>>, vector<1x8xf32>
    %126 = arith.mulf %125, %8 : vector<1x8xf32>
    %127 = arith.truncf %126 : vector<1x8xf32> to vector<1x8xbf16>
    %128 = arith.truncf %121 : vector<8x256xf32> to vector<8x256xbf16>
    %cst_41 = arith.constant dense<0.000000e+00> : vector<1x256xf32>
    %129 = tpu.matmul %127, %128, %cst_41 {dimension_numbers = #tpu.dot_dimension_numbers<[1], [0], [0], [1], [0, 0, 1, 1], [], []>} : vector<1x8xbf16>, vector<8x256xbf16>, vector<1x256xf32> -> vector<1x256xf32>
    %c2 = arith.constant 2 : index
    %130 = memref.load %arg12[%c2] : memref<3xf32, #tpu.memory_space<smem>>
    %131 = vector.broadcast %130 : f32 to vector<1x256xf32>
    %132 = arith.addf %129, %131 : vector<1x256xf32>
    %cst_42 = arith.constant 0.000000e+00 : f32
    %133 = vector.broadcast %cst_42 : f32 to vector<1x256xf32>
    %134 = arith.cmpf oge, %132, %133 : vector<1x256xf32>
    %cst_43 = arith.constant 2.000000e-01 : f32
    %135 = vector.broadcast %cst_43 : f32 to vector<1x256xf32>
    %136 = arith.mulf %135, %132 : vector<1x256xf32>
    %137 = arith.select %134, %132, %136 : vector<1x256xi1>, vector<1x256xf32>
    %c0_44 = arith.constant 0 : index
    %c0_45 = arith.constant 0 : index
    %c0_46 = arith.constant 0 : index
    %138 = vector.load %arg14[%c0_44, %c0_45, %c0_46] : memref<1x1x256xf32, #tpu.memory_space<vmem>>, vector<1x1x256xf32>
    %139 = vector.shape_cast %138 : vector<1x1x256xf32> to vector<1x256xf32>
    %140 = vector.shape_cast %137 : vector<1x256xf32> to vector<1x1x256xf32>
    tpu.vector_store %arg14[%c0_44, %c0_45, %c0_46], %140 {strides = array<i32>} : memref<1x1x256xf32, #tpu.memory_space<vmem>>, vector<1x1x256xf32>,
    return
  }
  func.func @transform_0(%arg0: i32) -> (i32, i32, i32) {
    %c0_i32 = arith.constant 0 : i32
    %c0_i32_0 = arith.constant 0 : i32
    %c0_i32_1 = arith.constant 0 : i32
    return %arg0, %c0_i32, %c0_i32_0 : i32, i32, i32
  }
  func.func @transform_1(%arg0: i32) -> (i32, i32, i32) {
    %c0_i32 = arith.constant 0 : i32
    %c0_i32_0 = arith.constant 0 : i32
    %c0_i32_1 = arith.constant 0 : i32
    return %arg0, %c0_i32, %c0_i32_0 : i32, i32, i32
  }
  func.func @transform_2(%arg0: i32) -> (i32, i32, i32) {
    %c0_i32 = arith.constant 0 : i32
    %c0_i32_0 = arith.constant 0 : i32
    %c0_i32_1 = arith.constant 0 : i32
    return %arg0, %c0_i32, %c0_i32_0 : i32, i32, i32
  }
  func.func @transform_3(%arg0: i32) -> (i32, i32, i32) {
    %c0_i32 = arith.constant 0 : i32
    %c0_i32_0 = arith.constant 0 : i32
    %c0_i32_1 = arith.constant 0 : i32
    return %arg0, %c0_i32, %c0_i32_0 : i32, i32, i32
  }
  func.func @transform_4(%arg0: i32) -> (i32, i32) {
    %c0_i32 = arith.constant 0 : i32
    %c0_i32_0 = arith.constant 0 : i32
    %c0_i32_1 = arith.constant 0 : i32
    return %c0_i32, %c0_i32_0 : i32, i32
  }
  func.func @transform_5(%arg0: i32) -> (i32, i32) {
    %c0_i32 = arith.constant 0 : i32
    %c0_i32_0 = arith.constant 0 : i32
    %c0_i32_1 = arith.constant 0 : i32
    return %c0_i32, %c0_i32_0 : i32, i32
  }
  func.func @transform_6(%arg0: i32) -> (i32, i32) {
    %c0_i32 = arith.constant 0 : i32
    %c0_i32_0 = arith.constant 0 : i32
    %c0_i32_1 = arith.constant 0 : i32
    return %c0_i32, %c0_i32_0 : i32, i32
  }
  func.func @transform_7(%arg0: i32) -> (i32, i32) {
    %c0_i32 = arith.constant 0 : i32
    %c0_i32_0 = arith.constant 0 : i32
    %c0_i32_1 = arith.constant 0 : i32
    return %c0_i32, %c0_i32_0 : i32, i32
  }
  func.func @transform_8(%arg0: i32) -> (i32, i32) {
    %c0_i32 = arith.constant 0 : i32
    %c0_i32_0 = arith.constant 0 : i32
    %c0_i32_1 = arith.constant 0 : i32
    return %c0_i32, %c0_i32_0 : i32, i32
  }
  func.func @transform_9(%arg0: i32) -> (i32, i32) {
    %c0_i32 = arith.constant 0 : i32
    %c0_i32_0 = arith.constant 0 : i32
    %c0_i32_1 = arith.constant 0 : i32
    return %c0_i32, %c0_i32_0 : i32, i32
  }
  func.func @transform_10(%arg0: i32) -> (i32, i32) {
    %c0_i32 = arith.constant 0 : i32
    %c0_i32_0 = arith.constant 0 : i32
    %c0_i32_1 = arith.constant 0 : i32
    return %c0_i32, %c0_i32_0 : i32, i32
  }
  func.func @transform_11(%arg0: i32) -> i32 {
    %c0_i32 = arith.constant 0 : i32
    %c0_i32_0 = arith.constant 0 : i32
    return %c0_i32 : i32
  }
  func.func @transform_12(%arg0: i32) -> (i32, i32, i32) {
    %c0_i32 = arith.constant 0 : i32
    %c0_i32_0 = arith.constant 0 : i32
    %c0_i32_1 = arith.constant 0 : i32
    return %arg0, %c0_i32, %c0_i32_0 : i32, i32, i32
  }
  func.func @transform_13(%arg0: i32) -> (i32, i32, i32) {
    %c0_i32 = arith.constant 0 : i32
    %c0_i32_0 = arith.constant 0 : i32
    %c0_i32_1 = arith.constant 0 : i32
    return %arg0, %c0_i32, %c0_i32_0 : i32, i32, i32
  }
}

</mosaic_0001>

<bundles_post_ra>
// kernel: tile.24
= control target key start
LH: loop header
LB: loop body
LE: loop exit
PB: predicated region body
PF: predicated region fallthrough
CT: control target
= control target key end

     0   :  { %vm46_vm0 = vcmask 261120   ;;  %s184_s0 = inlined_call_operand.vmem [shape: f32[32,9,4], index: 0, kind: input, shape index: {}]   ;;  %s185_s1 = inlined_call_operand.vmem [shape: f32[32,36], index: 1, kind: output, shape index: {}]  }
   0x1   :  { %v95_v0 = vld [vmem:[%s184_s0 + $0x20] sm:$0xf]  ;;  %v96_v1 = vld [vmem:[%s184_s0 + $0x1c] sm:$0xf]  ;;  %v97_v2 = vld [vmem:[%s184_s0 + $0x18] sm:$0xf] }
   0x2   :  { %8 = vst [vmem:[#allocation0 + $0x40] sm:$0xf] %v95_v0  ;;  %13 = vst [vmem:[#allocation0 + $0x38] sm:$0xf] %v96_v1  ;;  %v98_v3 = vld [vmem:[%s184_s0 + $0x14] sm:$0xf] }
   0x3   :  { %18 = vst [vmem:[#allocation0 + $0x30] sm:$0xf] %v97_v2  ;;  %v99_v4 = vld [vmem:[%s184_s0 + $0x10] sm:$0xf]  ;;  %v100_v5 = vld [vmem:[%s184_s0 + $0xc] sm:$0xf] }
   0x4   :  { %23 = vst [vmem:[#allocation0 + $0x28] sm:$0xf] %v98_v3  ;;  %28 = vst [vmem:[#allocation0 + $0x20] sm:$0xf] %v99_v4  ;;  %v101_v6 = vld [vmem:[%s184_s0 + $0x8] sm:$0xf] }
   0x5   :  { %33 = vst [vmem:[#allocation0 + $0x18] sm:$0xf] %v100_v5  ;;  %v102_v7 = vld [vmem:[%s184_s0 + $0x4] sm:$0xf]  ;;  %v43_v8 = vld [vmem:[%s184_s0] sm:$0xf] }
   0x6   :  { %38 = vst [vmem:[#allocation0 + $0x10] sm:$0xf] %v101_v6  ;;  %42 = vst [vmem:[#allocation0 + $0x8] sm:$0xf] %v102_v7 }
   0x7   :  { %44 = vst [vmem:[#allocation0] sm:$0xf] %v43_v8 }
   0x9   :  { %v79_v10 = vld [vmem:[#allocation0 + $0x38] sm:$0xf]   ;;  %v84_v11 = vld [vmem:[#allocation0 + $0x40] sm:$0xf]  }
   0xa   :  { %v74_v9 = vld [vmem:[#allocation0 + $0x30] sm:$0xf]   ;;  %109 = vst.msk [vmem:[%s185_s1 + $0x1c] sm:$0xf] %vm46_vm0, %v79_v10   ;;  %110 = vst.msk [vmem:[%s185_s1 + $0x20] sm:$0xf] %vm46_vm0, %v84_v11  }
   0xb   :  { %v64_v13 = vld [vmem:[#allocation0 + $0x20] sm:$0xf]   ;;  %v69_v14 = vld [vmem:[#allocation0 + $0x28] sm:$0xf]   ;;  %108 = vst.msk [vmem:[%s185_s1 + $0x18] sm:$0xf] %vm46_vm0, %v74_v9  }
   0xc   :  { %v59_v12 = vld [vmem:[#allocation0 + $0x18] sm:$0xf]   ;;  %106 = vst.msk [vmem:[%s185_s1 + $0x10] sm:$0xf] %vm46_vm0, %v64_v13   ;;  %107 = vst.msk [vmem:[%s185_s1 + $0x14] sm:$0xf] %vm46_vm0, %v69_v14  }
   0xd   :  { %v49_v16 = vld [vmem:[#allocation0 + $0x8] sm:$0xf]   ;;  %v54_v17 = vld [vmem:[#allocation0 + $0x10] sm:$0xf]   ;;  %105 = vst.msk [vmem:[%s185_s1 + $0xc] sm:$0xf] %vm46_vm0, %v59_v12  }
   0xe   :  { %v45_v15 = vld [vmem:[#allocation0] sm:$0xf]   ;;  %103 = vst.msk [vmem:[%s185_s1 + $0x4] sm:$0xf] %vm46_vm0, %v49_v16   ;;  %104 = vst.msk [vmem:[%s185_s1 + $0x8] sm:$0xf] %vm46_vm0, %v54_v17  }
   0xf   :  { %47 = vst.msk [vmem:[%s185_s1] sm:$0xf] %vm46_vm0, %v45_v15  }

// kernel: tile.38
= control target key start
LH: loop header
LB: loop body
LE: loop exit
PB: predicated region body
PF: predicated region fallthrough
CT: control target
= control target key end

     0   :  { %s28_s0 = inlined_call_operand.vmem [shape: f32[8], index: 0, kind: input, shape index: {}]   ;;  %s29_s1 = inlined_call_operand.vmem [shape: f32[9,8], index: 1, kind: output, shape index: {}]  }
   0x1   :  { %v4_v0 = vld [vmem:[%s28_s0] ss:$0 sm:$0xff] }
   0x2   :  { %5 = vst [vmem:[%s29_s1] sm:$0xff] %v4_v0  ;;  %8 = vst [vmem:[%s29_s1 + $0x8] sm:$0xff] %v4_v0 }

// kernel: tile.39
= control target key start
LH: loop header
LB: loop body
LE: loop exit
PB: predicated region body
PF: predicated region fallthrough
CT: control target
= control target key end

     0   :  { %s75_s10 = smov 64   ;;  %s76_s11 = smov 48   ;;  %vm3_vm0 = vcmask 64512   ;;  %vm9_vm1 = vcmask 589312   ;;  %vm15_vm2 = vcmask 523712   ;;  %vm21_vm3 = vcmask 458112   ;;  %s123_s0 = inlined_call_operand.vmem [shape: f32[9,8], index: 0, kind: input, shape index: {}]   ;;  %s124_s1 = inlined_call_operand.vmem [shape: f32[72], index: 1, kind: output, shape index: {}]  }
   0x1   :  { %v59_v0 = vld [vmem:[%s123_s0 + $0x8] sm:$0x1]   ;;  %v61_v1 = vld [vmem:[%s123_s0 + $0x6] sm:$0x1]   ;;  %v60_v2 = vld [vmem:[%s123_s0 + $0x7] sm:$0x1]  }
   0x2   :  { %7 = vrot.lane.b32.xlu0 %v59_v0, %s75_s10  ;;  %19 = vrot.lane.b32.xlu1 %v61_v1, %s76_s11  ;;  %v62_v3 = vld [vmem:[%s123_s0 + $0x5] sm:$0x1]   ;;  %v2_v4 = vld [vmem:[%s123_s0] sm:$0x1]   ;;  %s77_s18 = smov 56   ;;  %s78_s19 = smov 40  }
   0x3   :  { %4 = vst.msk [vmem:[#allocation0] sm:$0x1] %vm3_vm0, %v2_v4   ;;  %v63_v5 = vld [vmem:[%s123_s0 + $0x4] sm:$0x1]   ;;  %v64_v6 = vld [vmem:[%s123_s0 + $0x3] sm:$0x1]  }
   0x4   :  { %s79_s24 = smov 32   ;;  %s80_s25 = smov 24   ;;  %v65_v7 = vld [vmem:[%s123_s0 + $0x2] sm:$0x1]   ;;  %v66_v8 = vld [vmem:[%s123_s0 + $0x1] sm:$0x1]  }
   0x5   :  { %s81_s0 = smov 16   ;;  %s82_s30 = smov 8   ;;  %vm27_vm4 = vcmask 392512   ;;  %vm33_vm5 = vcmask 326912   ;;  %vm39_vm6 = vcmask 261312   ;;  %vm45_vm7 = vcmask 195712  }
   0x6   :  { %13 = vrot.lane.b32.xlu0 %v60_v2, %s77_s18  ;;  %25 = vrot.lane.b32.xlu1 %v62_v3, %s78_s19  ;;  %vm51_vm8 = vcmask 130112  }
   0xa   :  { %31 = vrot.lane.b32.xlu0 %v63_v5, %s79_s24  ;;  %37 = vrot.lane.b32.xlu1 %v64_v6, %s80_s25 }
   0xe   :  { %43 = vrot.lane.b32.xlu0 %v65_v7, %s81_s0  ;;  %49 = vrot.lane.b32.xlu1 %v66_v8, %s82_s30 }
  0x74   :  { %v8_v9 = vpop.permute.xlu0 %7   ;;  %v20_v10 = vpop.permute.xlu1 %19  }
  0x75   :  { %10 = vst.msk [vmem:[#allocation0] sm:$0x1] %vm9_vm1, %v8_v9  }
  0x78   :  { %v14_v11 = vpop.permute.xlu0 %13   ;;  %v26_v12 = vpop.permute.xlu1 %25  }
  0x79   :  { %16 = vst.msk [vmem:[#allocation0] sm:$0x1] %vm15_vm2, %v14_v11  }
  0x7a   :  { %22 = vst.msk [vmem:[#allocation0] sm:$0x1] %vm21_vm3, %v20_v10  }
  0x7b   :  { %28 = vst.msk [vmem:[#allocation0] sm:$0x1] %vm27_vm4, %v26_v12  }
  0x7c   :  { %v32_v13 = vpop.permute.xlu0 %31   ;;  %v38_v14 = vpop.permute.xlu1 %37  }
  0x7d   :  { %34 = vst.msk [vmem:[#allocation0] sm:$0x1] %vm33_vm5, %v32_v13  }
  0x7e   :  { %40 = vst.msk [vmem:[#allocation0] sm:$0x1] %vm39_vm6, %v38_v14  }
  0x80   :  { %v44_v15 = vpop.permute.xlu0 %43   ;;  %v50_v16 = vpop.permute.xlu1 %49  }
  0x81   :  { %46 = vst.msk [vmem:[#allocation0] sm:$0x1] %vm45_vm7, %v44_v15  }
  0x82   :  { %52 = vst.msk [vmem:[#allocation0] sm:$0x1] %vm51_vm8, %v50_v16  }
  0x89   :  { %v56_v17 = vld [vmem:[#allocation0] sm:$0x1] }
  0x8a   :  { %58 = vst [vmem:[%s124_s1] sm:$0x1] %v56_v17 }

// kernel: tile.33
= control target key start
LH: loop header
LB: loop body
LE: loop exit
PB: predicated region body
PF: predicated region fallthrough
CT: control target
= control target key end

     0   :  { %s28_s0 = inlined_call_operand.vmem [shape: f32[4], index: 0, kind: input, shape index: {}]   ;;  %s29_s1 = inlined_call_operand.vmem [shape: f32[9,4], index: 1, kind: output, shape index: {}]  }
   0x1   :  { %v4_v0 = vld [vmem:[%s28_s0] ss:$0 sm:$0xff] }
   0x2   :  { %5 = vst [vmem:[%s29_s1] sm:$0xff] %v4_v0  ;;  %8 = vst [vmem:[%s29_s1 + $0x8] sm:$0xff] %v4_v0 }

// kernel: tile.34
= control target key start
LH: loop header
LB: loop body
LE: loop exit
PB: predicated region body
PF: predicated region fallthrough
CT: control target
= control target key end

     0   :  { %s75_s10 = smov 32   ;;  %s76_s11 = smov 24   ;;  %vm3_vm0 = vcmask 31744   ;;  %vm9_vm1 = vcmask 294144   ;;  %vm15_vm2 = vcmask 261344   ;;  %vm21_vm3 = vcmask 228544   ;;  %s123_s0 = inlined_call_operand.vmem [shape: f32[9,4], index: 0, kind: input, shape index: {}]   ;;  %s124_s1 = inlined_call_operand.vmem [shape: f32[36], index: 1, kind: output, shape index: {}]  }
   0x1   :  { %v59_v0 = vld [vmem:[%s123_s0 + $0x8] sm:$0x1]   ;;  %v61_v1 = vld [vmem:[%s123_s0 + $0x6] sm:$0x1]   ;;  %v60_v2 = vld [vmem:[%s123_s0 + $0x7] sm:$0x1]  }
   0x2   :  { %7 = vrot.lane.b32.xlu0 %v59_v0, %s75_s10  ;;  %19 = vrot.lane.b32.xlu1 %v61_v1, %s76_s11  ;;  %v62_v3 = vld [vmem:[%s123_s0 + $0x5] sm:$0x1]   ;;  %v2_v4 = vld [vmem:[%s123_s0] sm:$0x1]   ;;  %s77_s18 = smov 28   ;;  %s78_s19 = smov 20  }
   0x3   :  { %4 = vst.msk [vmem:[#allocation0] sm:$0x1] %vm3_vm0, %v2_v4   ;;  %v63_v5 = vld [vmem:[%s123_s0 + $0x4] sm:$0x1]   ;;  %v64_v6 = vld [vmem:[%s123_s0 + $0x3] sm:$0x1]  }
   0x4   :  { %s79_s24 = smov 16   ;;  %s80_s25 = smov 12   ;;  %v65_v7 = vld [vmem:[%s123_s0 + $0x2] sm:$0x1]   ;;  %v66_v8 = vld [vmem:[%s123_s0 + $0x1] sm:$0x1]  }
   0x5   :  { %s81_s0 = smov 8   ;;  %s82_s30 = smov 4   ;;  %vm27_vm4 = vcmask 195744   ;;  %vm33_vm5 = vcmask 162944   ;;  %vm39_vm6 = vcmask 130144   ;;  %vm45_vm7 = vcmask 97344  }
   0x6   :  { %13 = vrot.lane.b32.xlu0 %v60_v2, %s77_s18  ;;  %25 = vrot.lane.b32.xlu1 %v62_v3, %s78_s19  ;;  %vm51_vm8 = vcmask 64544  }
   0xa   :  { %31 = vrot.lane.b32.xlu0 %v63_v5, %s79_s24  ;;  %37 = vrot.lane.b32.xlu1 %v64_v6, %s80_s25 }
   0xe   :  { %43 = vrot.lane.b32.xlu0 %v65_v7, %s81_s0  ;;  %49 = vrot.lane.b32.xlu1 %v66_v8, %s82_s30 }
  0x74   :  { %v8_v9 = vpop.permute.xlu0 %7   ;;  %v20_v10 = vpop.permute.xlu1 %19  }
  0x75   :  { %10 = vst.msk [vmem:[#allocation0] sm:$0x1] %vm9_vm1, %v8_v9  }
  0x78   :  { %v14_v11 = vpop.permute.xlu0 %13   ;;  %v26_v12 = vpop.permute.xlu1 %25  }
  0x79   :  { %16 = vst.msk [vmem:[#allocation0] sm:$0x1] %vm15_vm2, %v14_v11  }
  0x7a   :  { %22 = vst.msk [vmem:[#allocation0] sm:$0x1] %vm21_vm3, %v20_v10  }
  0x7b   :  { %28 = vst.msk [vmem:[#allocation0] sm:$0x1] %vm27_vm4, %v26_v12  }
  0x7c   :  { %v32_v13 = vpop.permute.xlu0 %31   ;;  %v38_v14 = vpop.permute.xlu1 %37  }
  0x7d   :  { %34 = vst.msk [vmem:[#allocation0] sm:$0x1] %vm33_vm5, %v32_v13  }
  0x7e   :  { %40 = vst.msk [vmem:[#allocation0] sm:$0x1] %vm39_vm6, %v38_v14  }
  0x80   :  { %v44_v15 = vpop.permute.xlu0 %43   ;;  %v50_v16 = vpop.permute.xlu1 %49  }
  0x81   :  { %46 = vst.msk [vmem:[#allocation0] sm:$0x1] %vm45_vm7, %v44_v15  }
  0x82   :  { %52 = vst.msk [vmem:[#allocation0] sm:$0x1] %vm51_vm8, %v50_v16  }
  0x89   :  { %v56_v17 = vld [vmem:[#allocation0] sm:$0x1] }
  0x8a   :  { %58 = vst [vmem:[%s124_s1] sm:$0x1] %v56_v17 }

// kernel: generator_block_forward.1
= control target key start
LH: loop header
LB: loop body
LE: loop exit
PB: predicated region body
PF: predicated region fallthrough
CT: control target
= control target key end

     0   :  { %19 = vsyncpa [#allocation3], 0  ;;  %s1429_s25 = smov 0   ;;  %s1631_s0 = inlined_call_operand.vmem [shape: f32[2,36,256], index: 0, kind: input, shape index: {}]   ;;  %s1632_s1 = inlined_call_operand.vmem [shape: f32[2,1,32], index: 1, kind: input, shape index: {}]   ;;  %s1633_s2 = inlined_call_operand.vmem [shape: f32[2,1,256], index: 2, kind: input, shape index: {}]   ;;  %s1634_s3 = inlined_call_operand.vmem [shape: f32[2,1,256], index: 3, kind: input, shape index: {}]   ;;  %s1635_s4 = inlined_call_operand.vmem [shape: f32[32,116], index: 4, kind: input, shape index: {}]   ;;  %s1636_s5 = inlined_call_operand.vmem [shape: f32[1,116], index: 5, kind: input, shape index: {}]   ;;  %s1637_s6 = inlined_call_operand.vmem [shape: f32[8,36], index: 6, kind: input, shape index: {}]   ;;  %s1638_s7 = inlined_call_operand.vmem [shape: f32[8,72], index: 7, kind: input, shape index: {}]   ;;  %s1639_s8 = inlined_call_operand.vmem [shape: f32[1,8], index: 8, kind: input, shape index: {}]   ;;  %s1640_s9 = inlined_call_operand.vmem [shape: f32[9,256], index: 9, kind: input, shape index: {}]   ;;  %s1641_s10 = inlined_call_operand.vmem [shape: f32[8,2], index: 10, kind: input, shape index: {}]   ;;  %s1642_s11 = inlined_call_operand.vmem [shape: f32[3], index: 11, kind: input, shape index: {}]   ;;  %s1643_s12 = inlined_call_operand.vmem [shape: f32[2,8,256], index: 12, kind: output, shape index: {0}]   ;;  %s1644_s13 = inlined_call_operand.vmem [shape: f32[2,1,256], index: 13, kind: output, shape index: {1}]  }
   0x1 LB: > { %s1435_s26 = sadd.s32 4294967295, %s1340_s25   ;;  %p1225_p0 = scmp.ge.s32.totalorder %s1340_s25, 1  ;;  %s1340_s25 = sphi %s1429_s25, %s25_s25  }
   0x2   : > { %p354_p1 = scmp.lt.s32.totalorder %s1340_s25, 3  ;;  %s388_s29 = sshll.u32 %s1642_s11, 4  ;;  %s389_s29 = int_to_ptr.vmem [resolvable:$true] %s388_s29 }
   0x3   : > { %p1281_p3 = scmp.eq.s32.totalorder %s1435_s26, 0  ;;  %s1315_s14 = scalar_lea.vmem %s389_s29, 16 }
   0x4   : > { %p1442_p2 = pnand %p1225_p0, %p354_p1  ;;  %p1316_p6 = scmp.ne.s32.totalorder %s389_s29, %s1315_s14 }
   0x5   : > { %p1323_p10 = scmp.lt.s32.totalorder %s389_s29, %s389_s29  ;;  %p1324_p11 = scmp.lt.s32.totalorder %s1315_s14, %s1315_s14 }
   0x6   : > { %p1277_p4 = pneg %p1442_p2 }
   0x7   : > { %p1325_p12 = por %p1324_p11, %p1323_p10 }
   0x8   : > { %p1278_p5 = pnand %p1281_p3, %p1277_p4 }
   0xa   : > { %p1317_p7 = pneg %p1278_p5 }
   0xc   : > { %p1318_p8 = pnand %p1317_p7, %p1316_p6 }
   0xe   : > { %p1319_p9 = pneg %p1318_p8 }
  0x10   : > { %p1326_p13 = pnand %p1325_p12, %p1319_p9 }
  0x12   : > { %1329 = shalt.err (!%p1326_p13)
}
  0x13   : > { %s1342_s15 = smov [#allocation2]   ;;  %429 = sbr.rel (%p1442_p2) target bundleno = 1245 (0x4dd), region = 68 }
  0x14   : > { %1280 = dma.vmem_to_smem (!%p1278_p5), %s389_s29, 16, %s1342_s15, [#allocation3]  }
  0x1a   : > { %1335 = dma.done.wait (%p1281_p3), [#allocation3], 16  }
  0x1b   : > { %1337 = vsyncadd (%p1281_p3), [#allocation3], 4294967280 }
  0x1c   : > { %435 = sfence }
  0x1d   : > { %v516_v0 = vld [vmem:[%s1635_s4] sm:$0xff]  ;;  %v517_v1 = vld [vmem:[%s1635_s4 + $0x8] sm:$0xff]  ;;  %v518_v2 = vld [vmem:[%s1635_s4 + $0x10] sm:$0xff]  ;;  %v1343_v3 = vmov 0.0|0.0   ;;  %vm1344_vm0 = vmmov 0   ;;  %v1345_v6 = vmov 0.0   ;;  %v596_v9 = vlaneseq }
  0x1e   : > { %1266 = vmatprep.subr.bf16.mxu0 %v1343_v3  ;;  %v1267_v4 = vpack.c.bf16 %v517_v1, %v516_v0  ;;  %v519_v5 = vld [vmem:[%s1635_s4 + $0x18] sm:$0xff]  ;;  %1263 = vmatprep.mubr.msk.f32.mxu0 %vm1344_vm0, %v1345_v6  ;;  %p489_p0 = scmp.lt.s32.totalorder %s1435_s26, 1  ;;  %vm521_vm1 = vcmask 261120   ;;  %v520_v11 = vld [vmem:[%s1636_s5] sm:$0x1]  ;;  %s1346_s16 = smov 92  }
  0x1f   : > { %v1270_v7 = vpack.c.bf16 %v519_v5, %v518_v2  ;;  %v1478_v10 = vshrl.u32 %v596_v9, 7  ;;  %v595_v16 = vld [vmem:[%s1637_s6] sm:$0xff]  ;;  %vm602_vm2 = vcmask 293888   ;;  %v1347_v28 = vmov 0   ;;  %s626_s27 = sld [smem:[#allocation2]]  ;;  %s1348_s15 = smov 127  }
  0x20   : > { %1268 = vmatpush3.bf16.msra.mxu0 %v1267_v4  ;;  %s1647_s26 = smov (!%p489_p0, %s1435_s26), 1  ;;  %683 = vmatprep.mubr.bf16.mxu1 %v1347_v28  ;;  %vm644_vm3 = vcmask 1041408   ;;  %v1501_v39 = vld [vmem:[%s1641_s10] sm:$0xff]  ;;  %vm889_vm4 = vcmask 588800   ;;  %s1351_s18 = smov 15   ;;  %vm717_vm7 = vcmask 138240  }
  0x21   : > { %1269 = vmatprep.subr.bf16.mxu0 %v1343_v3  ;;  %s496_s28 = scalar_lea.vmem %s1632_s1, %s1647_s26  ;;  %v1484_v12 = vsub.s32 0, %v1478_v10  ;;  %s1272_s17 = smul.u32 80, %s1647_s26  ;;  %1308 = vset.pattern.permute.xlu0 %v1347_v28  ;;  %v882_v40 = vld [vmem:[%s1638_s7] sm:$0xff]  ;;  %v1521_v53 = vsub.s32 1, %v1478_v10  ;;  %v1354_v5 = vmov 1966171168  }
  0x22   : > { %v515_v8 = vld [vmem:[%s496_s28] sm:$0x1]  ;;  %s1514_s28 = sshll.u32 %s1647_s26, 1  ;;  %s1352_s19 = smov 1   ;;  %v990_v6 = vunpack.c.l.s4 %v1354_v5  ;;  %vm777_vm8 = vcmask 7168   ;;  %vm757_vm9 = vcmask 121856  }
  0x23   : > { %s493_s20 = scalar_lea.vmem %s1631_s0, %s1272_s17  ;;  %s500_s14 = scalar_lea.vmem %s1633_s2, %s1514_s28  ;;  %vm737_vm10 = vcmask 130048   ;;  %vm806_vm11 = vcmask 1039360   ;;  %vm826_vm12 = vcmask 924672   ;;  %vm846_vm13 = vcmask 916480  }
  0x24   : > { %1271 = vmatpush3.bf16.msra.mxu0 %v1270_v7  ;;  %v611_v21 = vld [vmem:[%s493_s20 + $0x8] sm:$0xff]  ;;  %v613_v22 = vld [vmem:[%s493_s20 + $0x18] sm:$0xff]  ;;  %v610_v23 = vld [vmem:[%s493_s20] sm:$0xff]  ;;  %s1350_s17 = smov 16   ;;  %s1355_s21 = smov 112   ;;  %v991_v7 = vunpack.c.0.s8 %v990_v6  ;;  %vm866_vm14 = vcmask 908288  }
  0x25   : > { %v621_v24 = vpack.c.bf16 %v613_v22, %v611_v21  ;;  %v612_v25 = vld [vmem:[%s493_s20 + $0x10] sm:$0xff]  ;;  %v615_v26 = vld [vmem:[%s493_s20 + $0x28] sm:$0xff]  ;;  %v617_v27 = vld [vmem:[%s493_s20 + $0x38] sm:$0xff]  ;;  %v628_v51 = vstv %s626_s27  ;;  %s1356_s22 = smov 111   ;;  %s1358_s23 = smov 20   ;;  %vm925_vm15 = vcmask 1043456  }
  0x26   : > { %v620_v29 = vpack.c.bf16 %v612_v25, %v610_v23  ;;  %v623_v30 = vpack.c.bf16 %v617_v27, %v615_v26  ;;  %v614_v31 = vld [vmem:[%s493_s20 + $0x20] sm:$0xff]  ;;  %v616_v32 = vld [vmem:[%s493_s20 + $0x30] sm:$0xff]  ;;  %v619_v33 = vld [vmem:[%s493_s20 + $0x48] sm:$0xf]  ;;  %v784_v23 = vsub.s32 3, %v1478_v10 }
  0x27   : > { %1264 = vmatmul.mubr.msk.f32.vlgmr.msra.gmra.mrb[0].mxu0 %vm521_vm1, %v515_v8  ;;  %651 = vmatprep.subr.bf16.mxu1 %v621_v24  ;;  %v618_v34 = vld [vmem:[%s493_s20 + $0x40] sm:$0xf]  ;;  %v622_v35 = vpack.c.bf16 %v616_v32, %v614_v31  ;;  %v625_v36 = vpack.c.bf16 %v619_v33, %v619_v33  ;;  %s1353_s20 = smov 113   ;;  %v1544_v8 = vsub.s32 %v991_v7, %v1478_v10  ;;  %v764_v24 = vsub.s32 2, %v1478_v10  ;;  %v1562_v25 = vld [vmem:[%s1640_s9 + $0x8] sm:$0xff] }
  0x28   : > { %964 = vmatprep.mubr.bf16.mxu0 %v1347_v28  ;;  %652 = vmatpush1.bf16.msra.mxu1 %v620_v29  ;;  %v624_v37 = vpack.c.bf16 %v618_v34, %v618_v34  ;;  %v627_v50 = vld [vmem:[%s500_s14] sm:$0x3]  ;;  %v814_v29 = vsub.s32 5, %v1478_v10  ;;  %v789_v32 = vrot.slane %v1562_v25, %v784_v23  ;;  %v854_v7 = vsub.s32 7, %v1478_v10 }
  0x29   : > { %653 = vmatprep.subr.bf16.mxu1 %v623_v30  ;;  %v629_v52 = vmul.f32 %v628_v51, %v627_v50  ;;  %v729_v30 = vrot.slane %v1562_v25, %v1484_v12 }
  0x2a   : > { %v646_v38 = vsel %vm644_vm3, %v624_v37, 0 }
  0x2b   : > { %v634_v54 = vrot.slane %v629_v52, %v1484_v12  ;;  %v638_v55 = vrot.slane %v629_v52, %v1521_v53 }
  0x2c   : > { %654 = vmatpush1.bf16.msra.mxu1 %v622_v35  ;;  %v749_v35 = vrot.slane %v1562_v25, %v1521_v53 }
  0x2d   : > { %1237 = vmatprep.subr.msk.bf16.mxu1 %vm644_vm3, %v625_v36  ;;  %v769_v36 = vrot.slane %v1562_v25, %v764_v24 }
  0x30   : > { %656 = vmatpush1.bf16.msra.mxu1 %v646_v38  ;;  %v794_v38 = vsub.s32 4, %v1478_v10 }
  0xfa   : > { %v591_v13 = vpop.f32.mrb[0].mxu0 }
  0xfb   : > { %v1486_v14 = vadd.f32 %v591_v13, %v520_v11  ;;  %v1265_v15 = vpop.f32.mrb[1].mxu0  ;;  %v1357_v11 = vmov 1  }
  0xfc   : > { %1309 = vset.pattern.permute.xlu1 %v1357_v11 }
  0xfd   : > { %v599_v17 = vrot.slane %v1486_v14, %v1484_v12  ;;  %v995_v13 = vrot.slane %v1486_v14, %v1544_v8  ;;  %v1556_v14 = vld [vmem:[%s1640_s9] sm:$0xff] }
  0xfe   : > { %v725_v26 = vrot.slane %v1556_v14, %v1484_v12  ;;  %v745_v34 = vrot.slane %v1556_v14, %v1521_v53 }
  0xff   : > { %884 = vrot.lane.b32.xlu1 %v599_v17, %s1346_s16  ;;  %v600_v18 = vmul.f32 %v599_v17, %v595_v16  ;;  %s1349_s16 = smov 17   ;;  %v1002_v15 = vrot.slane %v995_v13, %v1544_v8  ;;  %v795_v13 = vrot.slane %v1556_v14, %v794_v38 }
 0x101   : > { %v601_v19 = vmul.f32 %v600_v18, %v600_v18 }
 0x103   : > { %v603_v20 = vsel %vm602_vm2, %v601_v19, 0.0 }
 0x104   : > { %604 = vadd.xlane.f32.xlu0 %v603_v20 }
 0x11a   : > { %695 = vperm.xlu0 %1308, %v1501_v39  }
 0x11e   : > { %1310 = vset.pattern.permute.xlu0 %v1357_v11 }
 0x171   : > { %v885_v41 = vpop.permute.xlu1 %884 }
 0x172   : > { %v1507_v42 = vmul.f32 %v885_v41, %v882_v40  ;;  %v785_v40 = vrot.slane %v1556_v14, %v784_v23  ;;  %v859_v23 = vrot.slane %v1562_v25, %v854_v7 }
 0x174   : > { %v888_v43 = vmul.f32 %v1507_v42, %v1507_v42 }
 0x176   : > { %v890_v44 = vsel %vm889_vm4, %v888_v43, 0.0  ;;  %v819_v43 = vrot.slane %v1562_v25, %v814_v29 }
 0x177   : > { %891 = vadd.xlane.f32.xlu1 %v890_v44 }
 0x191   : > { %v605_v45 = vpop.xlane.xlu0 %604 }
 0x192   : > { %v606_v46 = vadd.f32 1e-08, %v605_v45 }
 0x194   : > { %1311 = vrsqrt.f32 %v606_v46 }
 0x199   : > { %v696_v57 = vpop.permute.xlu0 %695 }
 0x19e   : > { %v1312_v47 = vpop.eup %1311 }
 0x19f   : > { %v608_v48 = vmul.f32 %v1312_v47, %v600_v18 }
 0x1a1   : > { %v609_v49 = vpack.c.bf16 %v608_v48, %v608_v48 }
 0x1a3   : > { %1238 = vmatmul.mubr.msk.bf16.vlgmr.msra.gmra.mrb[0].mxu1 %vm602_vm2, %v609_v49  ;;  %vm1012_vm2 = vcmask 64512  }
 0x1a4   : > { %1054 = vmatprep.mubr.bf16.mxu1 %v1347_v28 }
 0x204   : > { %v892_v16 = vpop.xlane.xlu1 %891 }
 0x205   : > { %v893_v52 = vadd.f32 1e-08, %v892_v16 }
 0x207   : > { %1313 = vrsqrt.f32 %v893_v52 }
 0x276   : > { %v685_v56 = vpop.f32.mrb[0].mxu1 }
 0x277   : > { %v686_v58 = vadd.f32 %v685_v56, %v634_v54  ;;  %v687_v59 = vpop.f32.mrb[1].mxu1  ;;  %v765_v54 = vrot.slane %v1556_v14, %v764_v24 }
 0x278   : > { %v688_v60 = vadd.f32 %v687_v59, %v638_v55  ;;  %v689_v61 = vpop.f32.mrb[2].mxu1  ;;  %v799_v55 = vrot.slane %v1562_v25, %v794_v38  ;;  %v1314_v38 = vpop.eup %1313 }
 0x279   : > { %v698_v62 = vadd.f32 %v696_v57, %v686_v58  ;;  %v690_v63 = vpop.f32.mrb[3].mxu1 }
 0x27a   : > { %v699_v0 = vadd.f32 %v696_v57, %v688_v60  ;;  %v815_v63 = vrot.slane %v1556_v14, %v814_v29 }
 0x27b   : > { %vm700_vm5 = vcmp.ge.f32.partialorder %v698_v62, 0.0  ;;  %v702_v1 = vmul.f32 0.2, %v698_v62 }
 0x27c   : > { %v703_v2 = vmul.f32 0.2, %v699_v0  ;;  %vm701_vm6 = vcmp.ge.f32.partialorder %v699_v0, 0.0 }
 0x27d   : > { %v1525_v3 = vsel %vm700_vm5, %v698_v62, %v702_v1  ;;  %v834_v1 = vsub.s32 6, %v1478_v10  ;;  %v855_v10 = vrot.slane %v1556_v14, %v854_v7  ;;  %vm1089_vm5 = vcmp.lt.s32.totalorder %v596_v9, 256 }
 0x27e   : > { %802 = vrot.lane.b32.xlu1 %v1525_v3, %s1348_s15  ;;  %715 = vrot.lane.b32.xlu0 %v1525_v3, %s1349_s16  ;;  %v1529_v4 = vsel %vm701_vm6, %v699_v0, %v703_v2  ;;  %v800_v24 = vmul.f32 %v795_v13, %v1525_v3 }
 0x27f   : > { %v801_v16 = vmul.f32 %v799_v55, %v1529_v4 }
 0x282   : > { %711 = vrot.lane.b32.xlu1 %v1529_v4, %s1349_s16  ;;  %735 = vrot.lane.b32.xlu0 %v1525_v3, %s1350_s17  ;;  %s513_s16 = scalar_lea.vmem %s1644_s13, %s1514_s28 }
 0x286   : > { %752 = vrot.lane.b32.xlu1 %v1529_v4, %s1351_s18  ;;  %755 = vrot.lane.b32.xlu0 %v1525_v3, %s1351_s18  ;;  %s1241_s18 = sld [smem:[#allocation2 + $0x1]] }
 0x28a   : > { %772 = vrot.lane.b32.xlu1 %v1529_v4, %s1352_s19  ;;  %775 = vrot.lane.b32.xlu0 %v1525_v3, %s1352_s19 }
 0x28e   : > { %822 = vrot.lane.b32.xlu1 %v1525_v3, %s1353_s20  ;;  %732 = vrot.lane.b32.xlu0 %v1529_v4, %s1350_s17 }
 0x292   : > { %842 = vrot.lane.b32.xlu1 %v1525_v3, %s1355_s21  ;;  %804 = vrot.lane.b32.xlu0 %v1529_v4, %s1348_s15 }
 0x296   : > { %862 = vrot.lane.b32.xlu1 %v1525_v3, %s1356_s22  ;;  %824 = vrot.lane.b32.xlu0 %v1529_v4, %s1353_s20  ;;  %v1240_v3 = vld [vmem:[%s1640_s9 + $0x18] ss:$0 sm:$0xff] }
 0x29a   : > { %844 = vrot.lane.b32.xlu0 %v1529_v4, %s1355_s21  ;;  %974 = vperm.xlu1 %1309, %v1501_v39   ;;  %s504_s21 = scalar_lea.vmem %s1634_s3, %s1514_s28 }
 0x29e   : > { %864 = vrot.lane.b32.xlu0 %v1529_v4, %s1356_s22  ;;  %s1249_s22 = sshll.u32 %s1647_s26, 4  ;;  %s1244_s26 = sld [smem:[#allocation2 + $0x2]] }
 0x29f   : > { %s509_s27 = scalar_lea.vmem %s1643_s12, %s1249_s22 }
 0x2a2   : > { %1003 = vrot.lane.b32.xlu0 %v1002_v15, %s1358_s23 }
 0x2f0   : > { %v803_v17 = vpop.permute.xlu1 %802  ;;  %v716_v18 = vpop.permute.xlu0 %715 }
 0x2f4   : > { %v712_v19 = vpop.permute.xlu1 %711  ;;  %v736_v20 = vpop.permute.xlu0 %735 }
 0x2f5   : > { %v721_v31 = vsel %vm717_vm7, %v712_v19, %v716_v18  ;;  %v718_v33 = vsel %vm717_vm7, %v716_v18, %v712_v19 }
 0x2f6   : > { %v730_v39 = vmul.f32 %v725_v26, %v721_v31  ;;  %v731_v44 = vmul.f32 %v729_v30, %v718_v33 }
 0x2f8   : > { %v753_v21 = vpop.permute.xlu1 %752  ;;  %v756_v22 = vpop.permute.xlu0 %755 }
 0x2f9   : > { %v758_v45 = vsel %vm757_vm9, %v756_v22, %v753_v21  ;;  %v761_v56 = vsel %vm757_vm9, %v753_v21, %v756_v22 }
 0x2fa   : > { %v771_v57 = vmul.f32 %v769_v36, %v758_v45  ;;  %v770_v11 = vmul.f32 %v765_v54, %v761_v56 }
 0x2fc   : > { %v773_v27 = vpop.permute.xlu1 %772  ;;  %v776_v28 = vpop.permute.xlu0 %775 }
 0x2fd   : > { %v778_v37 = vsel %vm777_vm8, %v776_v28, %v773_v27  ;;  %v781_v48 = vsel %vm777_vm8, %v773_v27, %v776_v28 }
 0x2fe   : > { %v791_v49 = vmul.f32 %v789_v32, %v778_v37  ;;  %v790_v62 = vmul.f32 %v785_v40, %v781_v48 }
 0x300   : > { %v733_v41 = vpop.permute.xlu0 %732  ;;  %v823_v58 = vpop.permute.xlu1 %822  ;;  %v900_v6 = vpack.c.bf16 %v791_v49, %v771_v57  ;;  %v899_v18 = vpack.c.bf16 %v790_v62, %v770_v11  ;;  %v908_v49 = vld [vmem:[%s504_s21] sm:$0x3] }
 0x301   : > { %v738_v46 = vsel %vm737_vm10, %v736_v20, %v733_v41  ;;  %v741_v47 = vsel %vm737_vm10, %v733_v41, %v736_v20  ;;  %v835_v20 = vrot.slane %v1556_v14, %v834_v1  ;;  %v1239_v14 = vld [vmem:[%s1640_s9 + $0x10] ss:$0 sm:$0xff] }
 0x302   : > { %v750_v50 = vmul.f32 %v745_v34, %v741_v47  ;;  %v751_v51 = vmul.f32 %v749_v35, %v738_v46 }
 0x304   : > { %v897_v59 = vpack.c.bf16 %v750_v50, %v730_v39  ;;  %v805_v60 = vpop.permute.xlu0 %804  ;;  %v898_v61 = vpack.c.bf16 %v751_v51, %v731_v44  ;;  %v843_v21 = vpop.permute.xlu1 %842  ;;  %v895_v44 = vmul.f32 %v1314_v38, %v1507_v42  ;;  %v909_v50 = vstv %s1241_s18 }
 0x305   : > { %v811_v0 = vsel %vm806_vm11, %v805_v60, %v803_v17  ;;  %v807_v2 = vsel %vm806_vm11, %v803_v17, %v805_v60  ;;  %v839_v17 = vrot.slane %v1562_v25, %v834_v1  ;;  %v910_v51 = vmul.f32 %v909_v50, %v908_v49 }
 0x306   : > { %v821_v5 = vmul.f32 %v819_v43, %v811_v0  ;;  %932 = vmatprep.subr.bf16.mxu0 %v898_v61  ;;  %v820_v19 = vmul.f32 %v815_v63, %v807_v2  ;;  %v896_v48 = vpack.c.bf16 %v895_v44, %v895_v44 }
 0x307   : > { %933 = vmatpush1.bf16.msra.mxu0 %v897_v59  ;;  %v915_v42 = vrot.slane %v910_v51, %v1484_v12  ;;  %v919_v52 = vrot.slane %v910_v51, %v1521_v53  ;;  %v987_v12 = vld [vmem:[%s1639_s8] sm:$0x1] }
 0x308   : > { %934 = vmatprep.subr.bf16.mxu0 %v900_v6  ;;  %v825_v15 = vpop.permute.xlu0 %824  ;;  %v902_v22 = vpack.c.bf16 %v821_v5, %v801_v16  ;;  %v901_v28 = vpack.c.bf16 %v820_v19, %v800_v24  ;;  %v863_v25 = vpop.permute.xlu1 %862 }
 0x309   : > { %v827_v26 = vsel %vm826_vm12, %v823_v58, %v825_v15  ;;  %v831_v27 = vsel %vm826_vm12, %v825_v15, %v823_v58  ;;  %v1011_v15 = vstv %s1244_s26 }
 0x30a   : > { %v840_v31 = vmul.f32 %v835_v20, %v827_v26  ;;  %v841_v32 = vmul.f32 %v839_v17, %v831_v27 }
 0x30b   : > { %935 = vmatpush1.bf16.msra.mxu0 %v899_v18 }
 0x30c   : > { %936 = vmatprep.subr.bf16.mxu0 %v902_v22  ;;  %v845_v4 = vpop.permute.xlu0 %844 }
 0x30d   : > { %v847_v29 = vsel %vm846_vm13, %v843_v21, %v845_v4  ;;  %v851_v30 = vsel %vm846_vm13, %v845_v4, %v843_v21 }
 0x30e   : > { %v860_v33 = vmul.f32 %v855_v10, %v847_v29  ;;  %v861_v34 = vmul.f32 %v859_v23, %v851_v30 }
 0x30f   : > { %937 = vmatpush1.bf16.msra.mxu0 %v901_v28 }
 0x310   : > { %v903_v35 = vpack.c.bf16 %v860_v33, %v840_v31  ;;  %v865_v36 = vpop.permute.xlu0 %864  ;;  %v904_v37 = vpack.c.bf16 %v861_v34, %v841_v32 }
 0x311   : > { %v867_v39 = vsel %vm866_vm14, %v863_v25, %v865_v36  ;;  %v871_v40 = vsel %vm866_vm14, %v865_v36, %v863_v25 }
 0x312   : > { %v880_v41 = vmul.f32 %v1239_v14, %v867_v39  ;;  %v881_v43 = vmul.f32 %v1240_v3, %v871_v40  ;;  %938 = vmatprep.subr.bf16.mxu0 %v904_v37 }
 0x313   : > { %939 = vmatpush1.bf16.msra.mxu0 %v903_v35 }
 0x314   : > { %v905_v45 = vpack.c.bf16 %v880_v41, %v880_v41  ;;  %v906_v46 = vpack.c.bf16 %v881_v43, %v881_v43  ;;  %v1004_v53 = vpop.permute.xlu0 %1003 }
 0x315   : > { %v1006_v6 = vmul.f32 %v1004_v53, %v987_v12 }
 0x316   : > { %1242 = vmatprep.subr.msk.bf16.mxu0 %vm925_vm15, %v906_v46  ;;  %v927_v47 = vsel %vm925_vm15, %v905_v45, 0 }
 0x317   : > { %941 = vmatpush1.bf16.msra.mxu0 %v927_v47  ;;  %v1007_v13 = vpack.c.bf16 %v1006_v6, %v1006_v6 }
 0x319   : > { %v975_v55 = vpop.permute.xlu1 %974 }
 0x31a   : > { %1243 = vmatmul.mubr.msk.bf16.vlgmr.msra.gmra.mrb[4].mxu0 %vm889_vm4, %v896_v48 }
 0x3ed   : > { %v966_v54 = vpop.f32.mrb[4].mxu0 }
 0x3ee   : > { %v967_v56 = vadd.f32 %v966_v54, %v915_v42  ;;  %v968_v57 = vpop.f32.mrb[5].mxu0 }
 0x3ef   : > { %v969_v58 = vadd.f32 %v968_v57, %v919_v52  ;;  %v970_v59 = vpop.f32.mrb[6].mxu0 }
 0x3f0   : > { %v977_v60 = vadd.f32 %v975_v55, %v967_v56  ;;  %v971_v61 = vpop.f32.mrb[7].mxu0 }
 0x3f1   : > { %v978_v62 = vadd.f32 %v975_v55, %v969_v58 }
 0x3f2   : > { %vm979_vm0 = vcmp.ge.f32.partialorder %v977_v60, 0.0  ;;  %v981_v63 = vmul.f32 0.2, %v977_v60 }
 0x3f3   : > { %vm980_vm1 = vcmp.ge.f32.partialorder %v978_v62, 0.0  ;;  %v982_v0 = vmul.f32 0.2, %v978_v62 }
 0x3f4   : > { %v983_v1 = vsel %vm979_vm0, %v977_v60, %v981_v63 }
 0x3f5   : > { %v984_v2 = vsel %vm980_vm1, %v978_v62, %v982_v0  ;;  %985 = vst [vmem:[%s509_s27] sm:$0xff] %v983_v1  ;;  %v1008_v5 = vpack.c.bf16 %v983_v1, %v983_v1 }
 0x3f6   : > { %986 = vst [vmem:[%s509_s27 + $0x8] sm:$0xff] %v984_v2  ;;  %v1009_v7 = vpack.c.bf16 %v984_v2, %v984_v2 }
 0x3f7   : > { %v1017_v11 = vsel %vm925_vm15, %v1008_v5, 0 }
 0x3f8   : > { %1245 = vmatprep.subr.msk.bf16.mxu1 %vm925_vm15, %v1009_v7 }
 0x3f9   : > { %1023 = vmatpush1.bf16.msra.mxu1 %v1017_v11 }
 0x3fc   : > { %1246 = vmatmul.mubr.msk.bf16.vlgmr.msra.gmra.mrb[4].mxu1 %vm1012_vm2, %v1007_v13 }
 0x4cf   : > { %v1056_v16 = vpop.f32.mrb[4].mxu1 }
 0x4d0   : > { %v1057_v18 = vadd.f32 %v1056_v16, %v1011_v15  ;;  %v1058_v19 = vpop.f32.mrb[5].mxu1 }
 0x4d1   : > { %v1059_v20 = vadd.f32 %v1058_v19, %v1011_v15  ;;  %v1060_v17 = vpop.f32.mrb[6].mxu1 }
 0x4d2   : > { %vm1063_vm3 = vcmp.ge.f32.partialorder %v1057_v18, 0.0  ;;  %v1065_v21 = vmul.f32 0.2, %v1057_v18  ;;  %v1061_v22 = vpop.f32.mrb[7].mxu1 }
 0x4d3   : > { %vm1064_vm4 = vcmp.ge.f32.partialorder %v1059_v20, 0.0  ;;  %v1066_v10 = vmul.f32 0.2, %v1059_v20 }
 0x4d4   : > { %v1067_v23 = vsel %vm1063_vm3, %v1057_v18, %v1065_v21 }
 0x4d5   : > { %v1068_v24 = vsel %vm1064_vm4, %v1059_v20, %v1066_v10 }
 0x4d6   : > { %v1071_v26 = vcombine.low %v1067_v23, %v1068_v24 }
 0x4d8   : > { %v1078_v27 = vrot.slane %v1071_v26, %v1544_v8 }
 0x4da   : > { %v1085_v4 = vrot.slane %v1078_v27, %v1544_v8 }
 0x4dc   : > { %1091 = vst.msk [vmem:[%s513_s16] sm:$0x3] %vm1089_vm5, %v1085_v4 }
 0x4dd PF: > { %s25_s25 = sadd.s32 1, %s1340_s25  }
 0x4de   : > { %p22_p1 = scmp.ge.s32.totalorder %s25_s25, 4  }
 0x4e0   :  { %24 = sbr.rel (!%p22_p1) target bundleno = 1 (0x1), region = 124 }
 0x4e7   :  { %1127 = vsyncpa [#allocation3], 1 }
 0x4e8   :  { %1129 = vsyncpa [#allocation3 + $0x1], 1 }

</bundles_post_ra>
